<compile_context>
chip_gen: v7x
topology: tpu7x:2x2x1
jax: 0.10.0
libtpu: 0.0.40
codegen_flags: <defaults>
</compile_context>

<pallas_src>
import functools

import jax
import jax.numpy as jnp
from jax.experimental import pallas as pl
from jax.experimental.pallas import tpu as pltpu

# ---- model hyper-params (as in the PyTorch module) ----
L = 512          # feature dim produced by backbone (resnet18 fc.in_features)
D = 128          # attention hidden dim
K = 1            # number of attention heads
NUM_CLASSES = 1


def _pick_bags_per_block(bs, n_inst, target_rows=256, max_rows=2048):
    """Pick bags per grid step so M = b_blk*n_inst fills the MXU.

    Prefer >= target_rows rows per step; only keep >= 2 grid steps (useful for
    v7x's two TensorCores) when every step still has >= target_rows rows,
    otherwise one big block beats extra ~0.35us/step overhead on v5e/v6e.
    """
    divs = [d for d in range(1, bs + 1) if bs % d == 0]
    feas = [d for d in divs if d * n_inst <= max_rows] or [1]
    split = [d for d in feas if (bs // d) >= 2 and d * n_inst >= target_rows]
    if split:
        return min(split)          # enough work per step AND >= 2 steps
    return max(feas)               # otherwise one (or few) big blocks


def _mil_kernel(h_ref, wvu_ref, bvu_ref, ww_ref, bw_ref, wc_ref, bc_ref,
                y_ref, a_ref, *, b_blk, n_pad, n_true):
    # h_ref block: (1, M, L) f32 with M = b_blk * n_pad (b_blk bags, bag-major)
    Hm = h_ref[0]                                                    # (M, L) f32

    # --- fused gated-attention MLP: one bf16 MXU matmul, f32 accumulation ---
    avu = jnp.dot(Hm.astype(jnp.bfloat16), wvu_ref[...],
                  preferred_element_type=jnp.float32) + bvu_ref[...]  # (M, 2D)
    a_v = jnp.tanh(avu[:, :D])                                        # (M, D)
    a_u = jax.nn.sigmoid(avu[:, D:])                                  # (M, D)
    gated = a_v * a_u                                                 # (M, D) f32

    # attention logits: Linear(D -> K=1) as VPU multiply + lane reduction
    logits = jnp.sum(gated * ww_ref[...], axis=-1, keepdims=True) + bw_ref[...]  # (M, 1)

    # per-bag softmax over the (padded) instance axis; n_pad % 8 == 0 so the
    # reshape splits the sublane axis on a tile boundary (free).
    lg = logits.reshape(b_blk, n_pad, 1)                              # (B, Np, 1)
    if n_pad != n_true:   # mask padded instances (static; skipped at demo shape)
        inst = jax.lax.broadcasted_iota(jnp.int32, (1, n_pad, 1), 1)
        lg = jnp.where(inst < n_true, lg, jnp.float32(-1e30))
    mx = jnp.max(lg, axis=1, keepdims=True)
    e = jnp.exp(lg - mx)
    attn = e * pl.reciprocal(jnp.sum(e, axis=1, keepdims=True), approx=True)  # (B, Np, 1)

    # attention-weighted pooling: m_b = sum_n attn[b,n] * H[b,n,:]   (K = 1)
    H3 = Hm.reshape(b_blk, n_pad, Hm.shape[-1])                       # (B, Np, L)
    if n_pad >= 128:
        # big bags: genuine (1,N)@(N,L) contraction -> MXU (not traced at demo N)
        m = jnp.einsum('bnk,bnl->bkl',
                       attn.astype(jnp.bfloat16), H3.astype(jnp.bfloat16),
                       preferred_element_type=jnp.float32)[:, 0, :]   # (B, L)
    else:
        m = jnp.sum(attn * H3, axis=1)                                # (B, L) VPU path

    # classifier Linear(L*K -> 1) as multiply + lane reduction
    y = jnp.sum(m * wc_ref[...], axis=-1, keepdims=True) + bc_ref[...]  # (B, 1)

    y_ref[0] = y                                                      # (1, B, 1)
    a_ref[0] = attn[..., 0]                                           # (1, B, Np) lane-dense


def gated_attention_mil_forward(x, params, bags_per_block=None):
    """x: (bs, N, ch, h, w) float32. Returns (Y: (bs, num_classes), A: (bs, K, N))."""
    bs, N, ch, h, w = x.shape
    (wf, bf, wv, bv, wu, bu, ww, bw, wc, bc) = params

    # torch Flatten over spatial dims + GAP + stand-in ch->L projection, hoisted
    # out of the kernel (the ch=4 contraction would waste the MXU and produce a
    # lane-masked kernel input).
    feat = jnp.mean(x.reshape(bs, N, ch, h * w).astype(jnp.float32), axis=-1)   # (bs,N,ch)
    Hfeat = feat @ wf + bf                                                      # (bs,N,L) f32
    # feature_dropout: identity in eval mode

    # Pad bags so the instance count is a sublane multiple (in-kernel reshapes
    # become layout no-ops); padded instances are masked in-kernel.
    n_pad = ((N + 7) // 8) * 8
    if n_pad != N:
        Hfeat = jnp.pad(Hfeat, ((0, 0), (0, n_pad - N), (0, 0)))

    b_blk = bags_per_block if bags_per_block is not None else _pick_bags_per_block(bs, n_pad)
    assert bs % b_blk == 0, "bags_per_block must divide batch size"
    num_blocks = bs // b_blk
    h_blocks = Hfeat.reshape(num_blocks, b_blk * n_pad, L)

    # Fuse the V/U attention weights into one (L, 2D) RHS; bf16 MXU operands.
    wvu = jnp.concatenate([wv, wu], axis=1).astype(jnp.bfloat16)   # (L, 2D)
    bvu = jnp.concatenate([bv, bu], axis=1)                        # (1, 2D) f32
    ww_row = ww.T                                                  # (K, D)   = (1, D)
    wc_row = wc.T                                                  # (C, L*K) = (1, L)

    full = lambda arr: pl.BlockSpec(arr.shape, lambda b: (0,) * arr.ndim)
    kernel = functools.partial(_mil_kernel, b_blk=b_blk, n_pad=n_pad, n_true=N)

    y3, a3 = pl.pallas_call(
        kernel,
        out_shape=(
            jax.ShapeDtypeStruct((num_blocks, b_blk, NUM_CLASSES), jnp.float32),
            jax.ShapeDtypeStruct((num_blocks, b_blk, n_pad), jnp.float32),
        ),
        grid_spec=pltpu.PrefetchScalarGridSpec(
            num_scalar_prefetch=0,
            grid=(num_blocks,),
            in_specs=[
                pl.BlockSpec((1, b_blk * n_pad, L), lambda b: (b, 0, 0)),
                full(wvu), full(bvu),
                full(ww_row), full(bw),
                full(wc_row), full(bc),
            ],
            out_specs=[
                pl.BlockSpec((1, b_blk, NUM_CLASSES), lambda b: (b, 0, 0)),
                pl.BlockSpec((1, b_blk, n_pad), lambda b: (b, 0, 0)),
            ],
        ),
        compiler_params=pltpu.CompilerParams(
            dimension_semantics=("parallel",),
            # Blocks are small (<1 MiB even at M=2048 rows) + ~0.4 MiB weights:
            # 32 MiB leaves ample headroom on v5e/v6e and stays under v7x's
            # 64 MiB physical VMEM.
            vmem_limit_bytes=32 * 1024 * 1024,
        ),
    )(h_blocks, wvu, bvu, ww_row, bw, wc_row, bc)

    Y = y3.reshape(bs, NUM_CLASSES)
    # Attention comes out lane-dense as (bs, n_pad); drop padding, add K axis.
    A = a3.reshape(bs, n_pad)[:, :N].reshape(bs, K, N)
    return Y, A


def init_params(key, ch):
    ks = jax.random.split(key, 6)
    scale = 0.05
    wf = scale * jax.random.normal(ks[0], (ch, L), jnp.float32)      # stand-in feat proj
    bf = jnp.zeros((1, L), jnp.float32)
    wv = scale * jax.random.normal(ks[1], (L, D), jnp.float32)       # attention_V Linear(L,D)^T
    bv = scale * jax.random.normal(ks[2], (1, D), jnp.float32)
    wu = scale * jax.random.normal(ks[3], (L, D), jnp.float32)       # attention_U Linear(L,D)^T
    bu = scale * jax.random.normal(ks[4], (1, D), jnp.float32)
    ww = scale * jax.random.normal(ks[5], (D, K), jnp.float32)       # attention_weights Linear(D,K)^T
    bw = jnp.zeros((1, K), jnp.float32)
    wc = scale * jax.random.normal(jax.random.fold_in(key, 7),
                                   (L * K, NUM_CLASSES), jnp.float32)  # classifier Linear(L*K,C)^T
    bc = jnp.zeros((1, NUM_CLASSES), jnp.float32)
    return (wf, bf, wv, bv, wu, bu, ww, bw, wc, bc)


def reference_forward(x, params):
    """Pure-JAX reference (mirrors the kernel's bf16 MXU-operand casting)."""
    (wf, bf, wv, bv, wu, bu, ww, bw, wc, bc) = params
    bs, N, ch, h, w = x.shape
    feat = jnp.mean(x.reshape(bs, N, ch, h * w), axis=-1)            # (bs,N,ch)
    H = feat @ wf + bf                                               # (bs,N,L) f32
    Hb = H.astype(jnp.bfloat16)
    A_V = jnp.tanh(jnp.dot(Hb, wv.astype(jnp.bfloat16),
                           preferred_element_type=jnp.float32) + bv)
    A_U = jax.nn.sigmoid(jnp.dot(Hb, wu.astype(jnp.bfloat16),
                                 preferred_element_type=jnp.float32) + bu)
    A = (A_V * A_U) @ ww + bw                                        # (bs,N,K)
    A = jnp.swapaxes(A, 1, 2)                                        # (bs,K,N)
    A = jax.nn.softmax(A, axis=2)
    m = jnp.einsum('bkn,bnl->bkl', A, H)                             # (bs,K,L)
    Y = m.reshape(bs, K * L) @ wc + bc                               # (bs,C)
    return Y, A


if __name__ == "__main__":
    key = jax.random.PRNGKey(0)
    bs, N, ch, h, w = 2, 8, 4, 16, 16
    x = jax.random.normal(jax.random.fold_in(key, 1), (bs, N, ch, h, w), jnp.float32)
    params = init_params(jax.random.fold_in(key, 2), ch)

    Y, A = gated_attention_mil_forward(x, params)
    jax.block_until_ready((Y, A))

    Y_ref, A_ref = reference_forward(x, params)
    assert Y.shape == (bs, NUM_CLASSES) and A.shape == (bs, K, N)
    # Tolerance loosened vs. pure-f32: bf16 MXU operands (mirrored in the
    # reference) + approx EUP reciprocal in the softmax.
    assert jnp.allclose(Y, Y_ref, atol=1e-3, rtol=1e-3), "Y mismatch"
    assert jnp.allclose(A, A_ref, atol=1e-3, rtol=1e-3), "A mismatch"

    print("KERNEL_OK")
</pallas_src>

<mosaic_0001>
module attributes {stable_mosaic.version = 11 : i64} {
  func.func @_mil_kernel(%arg0: i32, %arg1: memref<1x16x512xf32, #tpu.memory_space<vmem>>, %arg2: memref<512x256xbf16, #tpu.memory_space<vmem>>, %arg3: memref<1x256xf32, #tpu.memory_space<vmem>>, %arg4: memref<1x128xf32, #tpu.memory_space<vmem>>, %arg5: memref<1x1xf32, #tpu.memory_space<vmem>>, %arg6: memref<1x512xf32, #tpu.memory_space<vmem>>, %arg7: memref<1x1xf32, #tpu.memory_space<vmem>>, %arg8: memref<1x2x1xf32, #tpu.memory_space<vmem>>, %arg9: memref<1x2x8xf32, #tpu.memory_space<vmem>>) attributes {dimension_semantics = [#tpu.dimension_semantics<parallel>], iteration_bounds = array<i64: 1>, scalar_prefetch = 0 : i64, scratch_operands = 0 : i64, tpu.core_type = #tpu.core_type<tc>, window_params = [{transform_indices = @transform_0, window_bounds = array<i64: 1, 16, 512>}, {pipeline_mode = #tpu.pipeline_mode<synchronous>, transform_indices = @transform_1, window_bounds = array<i64: 512, 256>}, {pipeline_mode = #tpu.pipeline_mode<synchronous>, transform_indices = @transform_2, window_bounds = array<i64: 1, 256>}, {pipeline_mode = #tpu.pipeline_mode<synchronous>, transform_indices = @transform_3, window_bounds = array<i64: 1, 128>}, {pipeline_mode = #tpu.pipeline_mode<synchronous>, transform_indices = @transform_4, window_bounds = array<i64: 1, 1>}, {pipeline_mode = #tpu.pipeline_mode<synchronous>, transform_indices = @transform_5, window_bounds = array<i64: 1, 512>}, {pipeline_mode = #tpu.pipeline_mode<synchronous>, transform_indices = @transform_6, window_bounds = array<i64: 1, 1>}, {transform_indices = @transform_7, window_bounds = array<i64: 1, 2, 1>}, {transform_indices = @transform_8, window_bounds = array<i64: 1, 2, 8>}]} {
    %c0 = arith.constant 0 : index
    %c0_0 = arith.constant 0 : index
    %c0_1 = arith.constant 0 : index
    %0 = vector.load %arg1[%c0, %c0_0, %c0_1] : memref<1x16x512xf32, #tpu.memory_space<vmem>>, vector<1x16x512xf32>
    %1 = vector.shape_cast %0 : vector<1x16x512xf32> to vector<16x512xf32>
    %2 = arith.truncf %1 : vector<16x512xf32> to vector<16x512xbf16>
    %c0_2 = arith.constant 0 : index
    %c0_3 = arith.constant 0 : index
    %3 = vector.load %arg2[%c0_2, %c0_3] : memref<512x256xbf16, #tpu.memory_space<vmem>>, vector<512x256xbf16>
    %cst = arith.constant dense<0.000000e+00> : vector<16x256xf32>
    %4 = tpu.matmul %2, %3, %cst {dimension_numbers = #tpu.dot_dimension_numbers<[1], [0], [0], [1], [0, 0, 1, 1], [], []>} : vector<16x512xbf16>, vector<512x256xbf16>, vector<16x256xf32> -> vector<16x256xf32>
    %c0_4 = arith.constant 0 : index
    %c0_5 = arith.constant 0 : index
    %5 = vector.load %arg3[%c0_4, %c0_5] : memref<1x256xf32, #tpu.memory_space<vmem>>, vector<1x256xf32>
    %6 = vector.broadcast %5 : vector<1x256xf32> to vector<16x256xf32>
    %7 = arith.addf %4, %6 : vector<16x256xf32>
    %8 = vector.extract_strided_slice %7 {offsets = [0, 0], sizes = [16, 128], strides = [1, 1]} : vector<16x256xf32> to vector<16x128xf32>
    %9 = math.tanh %8 : vector<16x128xf32>
    %10 = vector.extract_strided_slice %7 {offsets = [0, 128], sizes = [16, 128], strides = [1, 1]} : vector<16x256xf32> to vector<16x128xf32>
    %11 = arith.negf %10 : vector<16x128xf32>
    %12 = math.exp %11 : vector<16x128xf32>
    %cst_6 = arith.constant 1.000000e+00 : f32
    %13 = vector.broadcast %cst_6 : f32 to vector<16x128xf32>
    %14 = arith.addf %13, %12 : vector<16x128xf32>
    %15 = arith.divf %13, %14 : vector<16x128xf32>
    %16 = arith.mulf %9, %15 : vector<16x128xf32>
    %c0_7 = arith.constant 0 : index
    %c0_8 = arith.constant 0 : index
    %17 = vector.load %arg4[%c0_7, %c0_8] : memref<1x128xf32, #tpu.memory_space<vmem>>, vector<1x128xf32>
    %18 = vector.broadcast %17 : vector<1x128xf32> to vector<16x128xf32>
    %19 = arith.mulf %16, %18 : vector<16x128xf32>
    %cst_9 = arith.constant dense<0.000000e+00> : vector<16xf32>
    %20 = vector.multi_reduction <add>, %19, %cst_9 [1] : vector<16x128xf32> to vector<16xf32>
    %21 = vector.shape_cast %20 : vector<16xf32> to vector<16x1xf32>
    %c0_10 = arith.constant 0 : index
    %c0_11 = arith.constant 0 : index
    %22 = vector.load %arg5[%c0_10, %c0_11] : memref<1x1xf32, #tpu.memory_space<vmem>>, vector<1x1xf32>
    %23 = vector.broadcast %22 : vector<1x1xf32> to vector<16x1xf32>
    %24 = arith.addf %21, %23 : vector<16x1xf32>
    %25 = vector.shape_cast %24 : vector<16x1xf32> to vector<2x8x1xf32>
    %cst_12 = arith.constant dense<0xFF800000> : vector<2x1xf32>
    %26 = vector.multi_reduction <maximumf>, %25, %cst_12 [1] : vector<2x8x1xf32> to vector<2x1xf32>
    %27 = vector.shape_cast %26 : vector<2x1xf32> to vector<2x1x1xf32>
    %28 = vector.broadcast %27 : vector<2x1x1xf32> to vector<2x8x1xf32>
    %29 = arith.subf %25, %28 : vector<2x8x1xf32>
    %30 = math.exp %29 : vector<2x8x1xf32>
    %cst_13 = arith.constant dense<0.000000e+00> : vector<2x1xf32>
    %31 = vector.multi_reduction <add>, %30, %cst_13 [1] : vector<2x8x1xf32> to vector<2x1xf32>
    %32 = vector.shape_cast %31 : vector<2x1xf32> to vector<2x1x1xf32>
    %33 = tpu.reciprocal %32 {approx = true} : vector<2x1x1xf32> -> vector<2x1x1xf32>
    %34 = vector.broadcast %33 : vector<2x1x1xf32> to vector<2x8x1xf32>
    %35 = arith.mulf %30, %34 : vector<2x8x1xf32>
    %36 = vector.shape_cast %1 : vector<16x512xf32> to vector<2x8x512xf32>
    %37 = vector.broadcast %35 : vector<2x8x1xf32> to vector<2x8x512xf32>
    %38 = arith.mulf %37, %36 : vector<2x8x512xf32>
    %cst_14 = arith.constant dense<0.000000e+00> : vector<2x512xf32>
    %39 = vector.multi_reduction <add>, %38, %cst_14 [1] : vector<2x8x512xf32> to vector<2x512xf32>
    %c0_15 = arith.constant 0 : index
    %c0_16 = arith.constant 0 : index
    %40 = vector.load %arg6[%c0_15, %c0_16] : memref<1x512xf32, #tpu.memory_space<vmem>>, vector<1x512xf32>
    %41 = vector.broadcast %40 : vector<1x512xf32> to vector<2x512xf32>
    %42 = arith.mulf %39, %41 : vector<2x512xf32>
    %cst_17 = arith.constant dense<0.000000e+00> : vector<2xf32>
    %43 = vector.multi_reduction <add>, %42, %cst_17 [1] : vector<2x512xf32> to vector<2xf32>
    %44 = vector.shape_cast %43 : vector<2xf32> to vector<2x1xf32>
    %c0_18 = arith.constant 0 : index
    %c0_19 = arith.constant 0 : index
    %45 = vector.load %arg7[%c0_18, %c0_19] : memref<1x1xf32, #tpu.memory_space<vmem>>, vector<1x1xf32>
    %46 = vector.broadcast %45 : vector<1x1xf32> to vector<2x1xf32>
    %47 = arith.addf %44, %46 : vector<2x1xf32>
    %c0_20 = arith.constant 0 : index
    %c0_21 = arith.constant 0 : index
    %c0_22 = arith.constant 0 : index
    %48 = vector.load %arg8[%c0_20, %c0_21, %c0_22] : memref<1x2x1xf32, #tpu.memory_space<vmem>>, vector<1x2x1xf32>
    %49 = vector.shape_cast %48 : vector<1x2x1xf32> to vector<2x1xf32>
    %50 = vector.shape_cast %47 : vector<2x1xf32> to vector<1x2x1xf32>
    tpu.vector_store %arg8[%c0_20, %c0_21, %c0_22], %50 {strides = array<i32>} : memref<1x2x1xf32, #tpu.memory_space<vmem>>, vector<1x2x1xf32>,
    %51 = vector.shape_cast %35 : vector<2x8x1xf32> to vector<2x8xf32>
    %c0_23 = arith.constant 0 : index
    %c0_24 = arith.constant 0 : index
    %c0_25 = arith.constant 0 : index
    %52 = vector.load %arg9[%c0_23, %c0_24, %c0_25] : memref<1x2x8xf32, #tpu.memory_space<vmem>>, vector<1x2x8xf32>
    %53 = vector.shape_cast %52 : vector<1x2x8xf32> to vector<2x8xf32>
    %54 = vector.shape_cast %51 : vector<2x8xf32> to vector<1x2x8xf32>
    tpu.vector_store %arg9[%c0_23, %c0_24, %c0_25], %54 {strides = array<i32>} : memref<1x2x8xf32, #tpu.memory_space<vmem>>, vector<1x2x8xf32>,
    return
  }
  func.func @transform_0(%arg0: i32) -> (i32, i32, i32) {
    %c0_i32 = arith.constant 0 : i32
    %c0_i32_0 = arith.constant 0 : i32
    %c0_i32_1 = arith.constant 0 : i32
    return %arg0, %c0_i32, %c0_i32_0 : i32, i32, i32
  }
  func.func @transform_1(%arg0: i32) -> (i32, i32) {
    %c0_i32 = arith.constant 0 : i32
    %c0_i32_0 = arith.constant 0 : i32
    %c0_i32_1 = arith.constant 0 : i32
    return %c0_i32, %c0_i32_0 : i32, i32
  }
  func.func @transform_2(%arg0: i32) -> (i32, i32) {
    %c0_i32 = arith.constant 0 : i32
    %c0_i32_0 = arith.constant 0 : i32
    %c0_i32_1 = arith.constant 0 : i32
    return %c0_i32, %c0_i32_0 : i32, i32
  }
  func.func @transform_3(%arg0: i32) -> (i32, i32) {
    %c0_i32 = arith.constant 0 : i32
    %c0_i32_0 = arith.constant 0 : i32
    %c0_i32_1 = arith.constant 0 : i32
    return %c0_i32, %c0_i32_0 : i32, i32
  }
  func.func @transform_4(%arg0: i32) -> (i32, i32) {
    %c0_i32 = arith.constant 0 : i32
    %c0_i32_0 = arith.constant 0 : i32
    %c0_i32_1 = arith.constant 0 : i32
    return %c0_i32, %c0_i32_0 : i32, i32
  }
  func.func @transform_5(%arg0: i32) -> (i32, i32) {
    %c0_i32 = arith.constant 0 : i32
    %c0_i32_0 = arith.constant 0 : i32
    %c0_i32_1 = arith.constant 0 : i32
    return %c0_i32, %c0_i32_0 : i32, i32
  }
  func.func @transform_6(%arg0: i32) -> (i32, i32) {
    %c0_i32 = arith.constant 0 : i32
    %c0_i32_0 = arith.constant 0 : i32
    %c0_i32_1 = arith.constant 0 : i32
    return %c0_i32, %c0_i32_0 : i32, i32
  }
  func.func @transform_7(%arg0: i32) -> (i32, i32, i32) {
    %c0_i32 = arith.constant 0 : i32
    %c0_i32_0 = arith.constant 0 : i32
    %c0_i32_1 = arith.constant 0 : i32
    return %arg0, %c0_i32, %c0_i32_0 : i32, i32, i32
  }
  func.func @transform_8(%arg0: i32) -> (i32, i32, i32) {
    %c0_i32 = arith.constant 0 : i32
    %c0_i32_0 = arith.constant 0 : i32
    %c0_i32_1 = arith.constant 0 : i32
    return %arg0, %c0_i32, %c0_i32_0 : i32, i32, i32
  }
}

</mosaic_0001>

<bundles_post_ra>
// kernel: tpu_custom_call.1
= control target key start
LH: loop header
LB: loop body
LE: loop exit
PB: predicated region body
PF: predicated region fallthrough
CT: control target
= control target key end

     0   :  { %s1281_s0 = inlined_call_operand.hbm [shape: f32[1,16,512], index: 0, kind: input, shape index: {}]   ;;  %s1282_s1 = inlined_call_operand.hbm [shape: bf16[512,256], index: 1, kind: input, shape index: {}]   ;;  %s1283_s2 = inlined_call_operand.vmem [shape: f32[1,256], index: 2, kind: input, shape index: {}]   ;;  %s1284_s3 = inlined_call_operand.vmem [shape: f32[1,128], index: 3, kind: input, shape index: {}]   ;;  %s1285_s4 = inlined_call_operand.<no memory space> [shape: f32[1,1], index: 4, kind: input, shape index: {}]   ;;  %s1286_s5 = inlined_call_operand.vmem [shape: f32[1,512], index: 5, kind: input, shape index: {}]   ;;  %s1287_s7 = inlined_call_operand.vmem [shape: f32[1,2,1], index: 7, kind: output, shape index: {0}]   ;;  %s1288_s8 = inlined_call_operand.hbm [shape: f32[1,2,8], index: 8, kind: output, shape index: {1}]   ;;  %s1289_s6 = inlined_call_operand.<no memory space> [shape: f32[1,1], index: 6, kind: input, shape index: {}]  }
   0x1   :  { %v14_v0 = vstv %s1285_s4  ;;  %v16_v1 = vstv %s1289_s6 }
   0x2   :  { %15 = vst [vmem:[#allocation2] sm:$0x1] %v14_v0  ;;  %17 = vst [vmem:[#allocation3] sm:$0x1] %v16_v1 }
   0x3   :  { %18 = vsyncpa [#allocation5], 0 }
   0x4   :  { %19 = vsyncpa [#allocation8], 0 }
   0x5   :  { %20 = vsyncpa [#allocation6], 0  ;;  %s1078_s9 = smov [#allocation4]   ;;  %s1006_s13 = scalar_lea.hbm %s1281_s0, 1024 }
   0x6   :  { %s26_s10 = sshll.u32 %s1078_s9, 4  ;;  %p1007_p0 = scmp.ne.s32.totalorder %s1281_s0, %s1006_s13  ;;  %s27_s10 = int_to_ptr.vmem [resolvable:$true] %s26_s10 }
   0x7   :  { %p1010_p1 = scmp.lt.u32.totalorder %s1006_s13, %s1281_s0 }
   0x9   :  { %p1012_p2 = pnand %p1010_p1, %p1007_p0 }
   0xb   :  { %1015 = shalt.err (!%p1012_p2)
}
   0xc   :  { %s1016_s6 = scalar_lea.vmem %s27_s10, 1024  ;;  %p1021_p4 = scmp.lt.s32.totalorder %s27_s10, %s27_s10 }
   0xd   :  { %p1017_p3 = scmp.ne.s32.totalorder %s27_s10, %s1016_s6  ;;  %p1022_p5 = scmp.lt.s32.totalorder %s1016_s6, %s1016_s6 }
   0xf   :  { %p1023_p6 = por %p1022_p5, %p1021_p4 }
  0x11   :  { %p1024_p7 = pnand %p1023_p6, %p1017_p3 }
  0x13   :  { %1027 = shalt.err (!%p1024_p7)
}
  0x14   :  { %s1079_s17 = smov 512   ;;  %s1080_s18 = smov 32  }
  0x15   :  { %32 = dma.hbm_to_vmem [thread:$0]  %s1281_s0, 1024, %s27_s10, [#allocation5], %s1079_s17, %s1079_s17, %s1080_s18  }
  0x16   :  { %s1081_s21 = smov [#allocation7]   ;;  %s1028_s25 = scalar_lea.hbm %s1282_s1, 8192 }
  0x17   :  { %s38_s22 = sshll.u32 %s1081_s21, 4  ;;  %p1029_p8 = scmp.ne.s32.totalorder %s1282_s1, %s1028_s25  ;;  %s39_s22 = int_to_ptr.vmem [resolvable:$true] %s38_s22 }
  0x18   :  { %p1032_p9 = scmp.lt.u32.totalorder %s1028_s25, %s1282_s1 }
  0x1a   :  { %p1034_p10 = pnand %p1032_p9, %p1029_p8 }
  0x1c   :  { %1037 = shalt.err (!%p1034_p10)
}
  0x1d   :  { %s1038_s30 = scalar_lea.vmem %s39_s22, 8192  ;;  %p1043_p12 = scmp.lt.s32.totalorder %s39_s22, %s39_s22 }
  0x1e   :  { %p1039_p11 = scmp.ne.s32.totalorder %s39_s22, %s1038_s30  ;;  %p1044_p13 = scmp.lt.s32.totalorder %s1038_s30, %s1038_s30 }
  0x20   :  { %p1045_p0 = por %p1044_p13, %p1043_p12 }
  0x22   :  { %p1046_p1 = pnand %p1045_p0, %p1039_p11 }
  0x24   :  { %1049 = shalt.err (!%p1046_p1)
}
  0x25   :  { %s1082_s0 = smov 128   ;;  %s1083_s9 = smov 8  }
  0x26   :  { %44 = dma.hbm_to_vmem [thread:$0]  %s1282_s1, 8192, %s39_s22, [#allocation8], %s1082_s0, %s1082_s0, %s1083_s9  }
  0x27   :  { %1072 = dma.done.wait [#allocation5], 1024  }
  0x28   :  { %1073 = vsyncadd [#allocation5], 4294966272 }
  0x29   :  { %1074 = dma.done.wait [#allocation8], 8192  }
  0x2a   :  { %1075 = vsyncadd [#allocation8], 4294959104  ;;  %v890_v2 = vld [vmem:[#allocation7 + $0x4] ss:$8 sps:$4 sm:$0xff]   ;;  %v894_v4 = vld [vmem:[#allocation7] ss:$8 sps:$4 sm:$0xff]  }
  0x2b   :  { %v892_v3 = vld [vmem:[#allocation7 + $0x104] ss:$8 sps:$4 sm:$0xff]   ;;  %469 = vmatprep.subr.bf16.mxu1 %v890_v2  ;;  %v895_v5 = vld [vmem:[#allocation7 + $0x100] ss:$8 sps:$4 sm:$0xff]   ;;  %v896_v6 = vld [vmem:[#allocation7 + $0x14] ss:$8 sps:$4 sm:$0xff]  }
  0x2c   :  { %512 = vmatprep.subr.bf16.mxu0 %v892_v3  ;;  %470 = vmatpush1.bf16.msra.mxu1 %v894_v4  ;;  %v898_v7 = vld [vmem:[#allocation7 + $0x114] ss:$8 sps:$4 sm:$0xff]   ;;  %v900_v8 = vld [vmem:[#allocation7 + $0x10] ss:$8 sps:$4 sm:$0xff]   ;;  %v902_v10 = vld [vmem:[#allocation7 + $0x24] ss:$8 sps:$4 sm:$0xff]  }
  0x2d   :  { %513 = vmatpush1.bf16.msra.mxu0 %v895_v5  ;;  %471 = vmatprep.subr.bf16.mxu1 %v896_v6  ;;  %v901_v9 = vld [vmem:[#allocation7 + $0x110] ss:$8 sps:$4 sm:$0xff]   ;;  %v904_v11 = vld [vmem:[#allocation7 + $0x124] ss:$8 sps:$4 sm:$0xff]   ;;  %v906_v12 = vld [vmem:[#allocation7 + $0x20] ss:$8 sps:$4 sm:$0xff]  }
  0x2e   :  { %514 = vmatprep.subr.bf16.mxu0 %v898_v7  ;;  %v907_v13 = vld [vmem:[#allocation7 + $0x120] ss:$8 sps:$4 sm:$0xff]   ;;  %v908_v14 = vld [vmem:[#allocation7 + $0x34] ss:$8 sps:$4 sm:$0xff]   ;;  %v912_v16 = vld [vmem:[#allocation7 + $0x30] ss:$8 sps:$4 sm:$0xff]  }
  0x2f   :  { %v910_v15 = vld [vmem:[#allocation7 + $0x134] ss:$8 sps:$4 sm:$0xff]   ;;  %v913_v17 = vld [vmem:[#allocation7 + $0x130] ss:$8 sps:$4 sm:$0xff]   ;;  %v914_v18 = vld [vmem:[#allocation7 + $0x44] ss:$8 sps:$4 sm:$0xff]  }
  0x30   :  { %472 = vmatpush1.bf16.msra.mxu1 %v900_v8  ;;  %v916_v19 = vld [vmem:[#allocation7 + $0x144] ss:$8 sps:$4 sm:$0xff]   ;;  %v918_v20 = vld [vmem:[#allocation7 + $0x40] ss:$8 sps:$4 sm:$0xff]   ;;  %v920_v22 = vld [vmem:[#allocation7 + $0x54] ss:$8 sps:$4 sm:$0xff]  }
  0x31   :  { %515 = vmatpush1.bf16.msra.mxu0 %v901_v9  ;;  %473 = vmatprep.subr.bf16.mxu1 %v902_v10  ;;  %v919_v21 = vld [vmem:[#allocation7 + $0x140] ss:$8 sps:$4 sm:$0xff]   ;;  %v922_v23 = vld [vmem:[#allocation7 + $0x154] ss:$8 sps:$4 sm:$0xff]   ;;  %v924_v24 = vld [vmem:[#allocation7 + $0x50] ss:$8 sps:$4 sm:$0xff]  }
  0x32   :  { %516 = vmatprep.subr.bf16.mxu0 %v904_v11  ;;  %v925_v25 = vld [vmem:[#allocation7 + $0x150] ss:$8 sps:$4 sm:$0xff]   ;;  %v926_v26 = vld [vmem:[#allocation7 + $0x64] ss:$8 sps:$4 sm:$0xff]   ;;  %v930_v28 = vld [vmem:[#allocation7 + $0x60] ss:$8 sps:$4 sm:$0xff]  }
  0x33   :  { %v928_v27 = vld [vmem:[#allocation7 + $0x164] ss:$8 sps:$4 sm:$0xff]   ;;  %v931_v29 = vld [vmem:[#allocation7 + $0x160] ss:$8 sps:$4 sm:$0xff]   ;;  %v932_v30 = vld [vmem:[#allocation7 + $0x74] ss:$8 sps:$4 sm:$0xff]  }
  0x34   :  { %474 = vmatpush1.bf16.msra.mxu1 %v906_v12  ;;  %v934_v31 = vld [vmem:[#allocation7 + $0x174] ss:$8 sps:$4 sm:$0xff]   ;;  %v936_v32 = vld [vmem:[#allocation7 + $0x70] ss:$8 sps:$4 sm:$0xff]   ;;  %v938_v34 = vld [vmem:[#allocation7 + $0x84] ss:$8 sps:$4 sm:$0xff]  }
  0x35   :  { %517 = vmatpush1.bf16.msra.mxu0 %v907_v13  ;;  %475 = vmatprep.subr.bf16.mxu1 %v908_v14  ;;  %v937_v33 = vld [vmem:[#allocation7 + $0x170] ss:$8 sps:$4 sm:$0xff]   ;;  %v940_v35 = vld [vmem:[#allocation7 + $0x184] ss:$8 sps:$4 sm:$0xff]   ;;  %v942_v36 = vld [vmem:[#allocation7 + $0x80] ss:$8 sps:$4 sm:$0xff]   ;;  %v139_v14 = vlaneseq }
  0x36   :  { %518 = vmatprep.subr.bf16.mxu0 %v910_v15  ;;  %v943_v37 = vld [vmem:[#allocation7 + $0x180] ss:$8 sps:$4 sm:$0xff]   ;;  %v944_v38 = vld [vmem:[#allocation7 + $0x94] ss:$8 sps:$4 sm:$0xff]   ;;  %v948_v40 = vld [vmem:[#allocation7 + $0x90] ss:$8 sps:$4 sm:$0xff]  }
  0x37   :  { %v946_v39 = vld [vmem:[#allocation7 + $0x194] ss:$8 sps:$4 sm:$0xff]   ;;  %v949_v41 = vld [vmem:[#allocation7 + $0x190] ss:$8 sps:$4 sm:$0xff]   ;;  %v950_v42 = vld [vmem:[#allocation7 + $0xa4] ss:$8 sps:$4 sm:$0xff]  }
  0x38   :  { %476 = vmatpush1.bf16.msra.mxu1 %v912_v16  ;;  %v952_v43 = vld [vmem:[#allocation7 + $0x1a4] ss:$8 sps:$4 sm:$0xff]   ;;  %v954_v44 = vld [vmem:[#allocation7 + $0xa0] ss:$8 sps:$4 sm:$0xff]   ;;  %v956_v46 = vld [vmem:[#allocation7 + $0xb4] ss:$8 sps:$4 sm:$0xff]  }
  0x39   :  { %519 = vmatpush1.bf16.msra.mxu0 %v913_v17  ;;  %477 = vmatprep.subr.bf16.mxu1 %v914_v18  ;;  %v955_v45 = vld [vmem:[#allocation7 + $0x1a0] ss:$8 sps:$4 sm:$0xff]   ;;  %v958_v47 = vld [vmem:[#allocation7 + $0x1b4] ss:$8 sps:$4 sm:$0xff]   ;;  %v960_v52 = vld [vmem:[#allocation7 + $0xb0] ss:$8 sps:$4 sm:$0xff]  }
  0x3a   :  { %520 = vmatprep.subr.bf16.mxu0 %v916_v19  ;;  %v1161_v48 = vld [vmem:[#allocation4 + $0x8] sm:$0xff]  ;;  %v1165_v50 = vld [vmem:[#allocation4 + $0x18] sm:$0xff]  ;;  %v1173_v8 = vld [vmem:[#allocation4] sm:$0xff]  ;;  %v1186_v15 = vshrl.u32 %v139_v14, 7  ;;  %vm593_vm0 = vcmask 7168   ;;  %vm737_vm1 = vcmask 1041409  }
  0x3b   :  { %v1163_v49 = vld [vmem:[#allocation4 + $0x28] sm:$0xff]  ;;  %v1167_v51 = vld [vmem:[#allocation4 + $0x38] sm:$0xff]  ;;  %v1175_v9 = vld [vmem:[#allocation4 + $0x20] sm:$0xff]  ;;  %vm749_vm2 = vcmask 1041408   ;;  %vm781_vm3 = vcmask 58368  }
  0x3c   :  { %478 = vmatpush1.bf16.msra.mxu1 %v918_v20  ;;  %v961_v53 = vld [vmem:[#allocation7 + $0x1b0] ss:$8 sps:$4 sm:$0xff]   ;;  %v70_v54 = vpack.c.bf16 %v1163_v49, %v1161_v48  ;;  %v72_v55 = vpack.c.bf16 %v1167_v51, %v1165_v50  ;;  %v962_v56 = vld [vmem:[#allocation7 + $0xc4] ss:$8 sps:$4 sm:$0xff]   ;;  %v966_v58 = vld [vmem:[#allocation7 + $0xc0] ss:$8 sps:$4 sm:$0xff]   ;;  %v69_v12 = vpack.c.bf16 %v1175_v9, %v1173_v8 }
  0x3d   :  { %521 = vmatpush1.bf16.msra.mxu0 %v919_v21  ;;  %479 = vmatprep.subr.bf16.mxu1 %v920_v22  ;;  %v964_v57 = vld [vmem:[#allocation7 + $0x1c4] ss:$8 sps:$4 sm:$0xff]   ;;  %v967_v59 = vld [vmem:[#allocation7 + $0x1c0] ss:$8 sps:$4 sm:$0xff]   ;;  %v968_v60 = vld [vmem:[#allocation7 + $0xd4] ss:$8 sps:$4 sm:$0xff]  }
  0x3e   :  { %522 = vmatprep.subr.bf16.mxu0 %v922_v23  ;;  %501 = vmatprep.mubr.bf16.mxu1 %v70_v54  ;;  %v970_v61 = vld [vmem:[#allocation7 + $0x1d4] ss:$8 sps:$4 sm:$0xff]   ;;  %v972_v62 = vld [vmem:[#allocation7 + $0xd0] ss:$8 sps:$4 sm:$0xff]   ;;  %v974_v0 = vld [vmem:[#allocation7 + $0xe4] ss:$8 sps:$4 sm:$0xff]  }
  0x3f   :  { %544 = vmatprep.mubr.bf16.mxu0 %v72_v55  ;;  %v973_v63 = vld [vmem:[#allocation7 + $0x1d0] ss:$8 sps:$4 sm:$0xff]   ;;  %v976_v1 = vld [vmem:[#allocation7 + $0x1e4] ss:$8 sps:$4 sm:$0xff]   ;;  %v978_v2 = vld [vmem:[#allocation7 + $0xe0] ss:$8 sps:$4 sm:$0xff]  }
  0x40   :  { %480 = vmatpush1.bf16.msra.mxu1 %v924_v24  ;;  %v979_v3 = vld [vmem:[#allocation7 + $0x1e0] ss:$8 sps:$4 sm:$0xff]   ;;  %v980_v4 = vld [vmem:[#allocation7 + $0xf4] ss:$8 sps:$4 sm:$0xff]   ;;  %v984_v6 = vld [vmem:[#allocation7 + $0xf0] ss:$8 sps:$4 sm:$0xff]  }
  0x41   :  { %523 = vmatpush1.bf16.msra.mxu0 %v925_v25  ;;  %481 = vmatprep.subr.bf16.mxu1 %v926_v26  ;;  %v982_v5 = vld [vmem:[#allocation7 + $0x1f4] ss:$8 sps:$4 sm:$0xff]   ;;  %v985_v7 = vld [vmem:[#allocation7 + $0x1f0] ss:$8 sps:$4 sm:$0xff]   ;;  %v141_v16 = vsub.s32 0, %v1186_v15  ;;  %v145_v18 = vsub.s32 1, %v1186_v15 }
  0x42   :  { %524 = vmatprep.subr.bf16.mxu0 %v928_v27  ;;  %v1177_v10 = vld [vmem:[#allocation4 + $0x10] sm:$0xff]  ;;  %v137_v17 = vld [vmem:[%s1283_s2] sm:$0x3] }
  0x43   :  { %v1179_v11 = vld [vmem:[#allocation4 + $0x30] sm:$0xff]  ;;  %v142_v19 = vrot.slane %v137_v17, %v141_v16  ;;  %v146_v20 = vrot.slane %v137_v17, %v145_v18 }
  0x44   :  { %482 = vmatpush1.bf16.msra.mxu1 %v930_v28  ;;  %v71_v13 = vpack.c.bf16 %v1179_v11, %v1177_v10 }
  0x45   :  { %525 = vmatpush1.bf16.msra.mxu0 %v931_v29  ;;  %483 = vmatprep.subr.bf16.mxu1 %v932_v30 }
  0x46   :  { %526 = vmatprep.subr.bf16.mxu0 %v934_v31 }
  0x48   :  { %484 = vmatpush1.bf16.msra.mxu1 %v936_v32 }
  0x49   :  { %527 = vmatpush1.bf16.msra.mxu0 %v937_v33  ;;  %485 = vmatprep.subr.bf16.mxu1 %v938_v34 }
  0x4a   :  { %528 = vmatprep.subr.bf16.mxu0 %v940_v35 }
  0x4c   :  { %486 = vmatpush1.bf16.msra.mxu1 %v942_v36 }
  0x4d   :  { %529 = vmatpush1.bf16.msra.mxu0 %v943_v37  ;;  %487 = vmatprep.subr.bf16.mxu1 %v944_v38 }
  0x4e   :  { %530 = vmatprep.subr.bf16.mxu0 %v946_v39 }
  0x50   :  { %488 = vmatpush1.bf16.msra.mxu1 %v948_v40 }
  0x51   :  { %531 = vmatpush1.bf16.msra.mxu0 %v949_v41  ;;  %489 = vmatprep.subr.bf16.mxu1 %v950_v42 }
  0x52   :  { %532 = vmatprep.subr.bf16.mxu0 %v952_v43 }
  0x54   :  { %490 = vmatpush1.bf16.msra.mxu1 %v954_v44 }
  0x55   :  { %533 = vmatpush1.bf16.msra.mxu0 %v955_v45  ;;  %491 = vmatprep.subr.bf16.mxu1 %v956_v46 }
  0x56   :  { %534 = vmatprep.subr.bf16.mxu0 %v958_v47 }
  0x58   :  { %492 = vmatpush1.bf16.msra.mxu1 %v960_v52 }
  0x59   :  { %535 = vmatpush1.bf16.msra.mxu0 %v961_v53  ;;  %493 = vmatprep.subr.bf16.mxu1 %v962_v56  ;;  %v869_v53 = vld [vmem:[%s1284_s3] ss:$0 sm:$0xff]  ;;  %v1084_v56 = vmov 0  }
  0x5a   :  { %536 = vmatprep.subr.bf16.mxu0 %v964_v57  ;;  %888 = vset.pattern.permute.xlu1 %v1084_v56  ;;  %v870_v57 = vld [vmem:[#allocation2] ss:$0 sm:$0xff] }
  0x5b   :  { %889 = vset.pattern.permute.xlu0 %v1084_v56 }
  0x5c   :  { %494 = vmatpush1.bf16.msra.mxu1 %v966_v58 }
  0x5d   :  { %537 = vmatpush1.bf16.msra.mxu0 %v967_v59  ;;  %495 = vmatprep.subr.bf16.mxu1 %v968_v60 }
  0x5e   :  { %538 = vmatprep.subr.bf16.mxu0 %v970_v61 }
  0x60   :  { %496 = vmatpush1.bf16.msra.mxu1 %v972_v62 }
  0x61   :  { %539 = vmatpush1.bf16.msra.mxu0 %v973_v63  ;;  %497 = vmatprep.subr.bf16.mxu1 %v974_v0 }
  0x62   :  { %540 = vmatprep.subr.bf16.mxu0 %v976_v1 }
  0x64   :  { %498 = vmatpush1.bf16.msra.mxu1 %v978_v2 }
  0x65   :  { %541 = vmatpush1.bf16.msra.mxu0 %v979_v3  ;;  %499 = vmatprep.subr.bf16.mxu1 %v980_v4 }
  0x66   :  { %542 = vmatprep.subr.bf16.mxu0 %v982_v5 }
  0x68   :  { %500 = vmatpush1.bf16.msra.mxu1 %v984_v6 }
  0x69   :  { %543 = vmatpush1.bf16.msra.mxu0 %v985_v7 }
  0x6b   :  { %502 = vmatmul.mubr.bf16.vlgmr.msra.gmra.mrb[0].mxu1 %v69_v12 }
  0x6c   :  { %545 = vmatmul.mubr.bf16.vlgmr.msra.gmra.mrb[0].mxu0 %v71_v13 }
 0x13e   :  { %v503_v21 = vpop.f32.mrb[0].mxu1 }
 0x13f   :  { %v546_v22 = vpop.f32.mrb[0].mxu0  ;;  %v504_v23 = vadd.f32 %v503_v21, %v142_v19  ;;  %v505_v24 = vpop.f32.mrb[1].mxu1 }
 0x140   :  { %v548_v25 = vpop.f32.mrb[1].mxu0  ;;  %v506_v26 = vadd.f32 %v505_v24, %v146_v20  ;;  %v507_v27 = vpop.f32.mrb[2].mxu1 }
 0x141   :  { %v550_v28 = vpop.f32.mrb[2].mxu0  ;;  %v547_v29 = vadd.f32 %v546_v22, %v504_v23  ;;  %v508_v30 = vadd.f32 %v507_v27, %v142_v19  ;;  %v509_v31 = vpop.f32.mrb[3].mxu1 }
 0x142   :  { %v552_v32 = vpop.f32.mrb[3].mxu0  ;;  %v549_v33 = vadd.f32 %v548_v25, %v506_v26  ;;  %v510_v34 = vadd.f32 %v509_v31, %v146_v20 }
 0x143   :  { %v551_v35 = vadd.f32 %v550_v28, %v508_v30 }
 0x144   :  { %v867_v36 = vmul.f32 -1.442695, %v549_v33  ;;  %v553_v37 = vadd.f32 %v552_v32, %v510_v34 }
 0x146   :  { %986 = vpow2.f32 %v867_v36  ;;  %v868_v38 = vmul.f32 -1.442695, %v553_v37 }
 0x148   :  { %988 = vpow2.f32 %v868_v38 }
 0x149   :  { %990 = vtanh.f32 %v547_v29 }
 0x150   :  { %v987_v39 = vpop.eup %986 }
 0x151   :  { %v563_v40 = vadd.f32 1.0, %v987_v39 }
 0x152   :  { %v989_v41 = vpop.eup %988 }
 0x153   :  { %992 = vrcp.f32 %v563_v40  ;;  %v564_v42 = vadd.f32 1.0, %v989_v41  ;;  %v991_v43 = vpop.eup %990 }
 0x154   :  { %994 = vtanh.f32 %v551_v35 }
 0x155   :  { %996 = vrcp.f32 %v564_v42 }
 0x15d   :  { %v993_v44 = vpop.eup %992 }
 0x15e   :  { %v995_v45 = vpop.eup %994  ;;  %v569_v46 = vmul.f32 %v993_v44, %v991_v43  ;;  %v698_v44 = vld [vmem:[%s1286_s5] sm:$0xf]  ;;  %s1085_s5 = smov [#allocation9]  }
 0x15f   :  { %v997_v47 = vpop.eup %996  ;;  %s791_s15 = sshll.u32 %s1085_s5, 4  ;;  %s792_s15 = int_to_ptr.vmem [resolvable:$true] %s791_s15 }
 0x160   :  { %v570_v52 = vmul.f32 %v997_v47, %v995_v45  ;;  %v578_v55 = vmul.f32 %v869_v53, %v569_v46  ;;  %v770_v46 = vand.u32 127, %v139_v14  ;;  %v710_v47 = vsub.s32 2, %v1186_v15  ;;  %s1050_s4 = scalar_lea.vmem %s792_s15, 32  ;;  %p1055_p3 = scmp.lt.s32.totalorder %s792_s15, %s792_s15 }
 0x161   :  { %p1051_p2 = scmp.ne.s32.totalorder %s792_s15, %s1050_s4  ;;  %p1056_p4 = scmp.lt.s32.totalorder %s1050_s4, %s1050_s4 }
 0x162   :  { %v579_v54 = vmul.f32 %v869_v53, %v570_v52  ;;  %v714_v52 = vsub.s32 3, %v1186_v15 }
 0x163   :  { %p1057_p5 = por %p1056_p4, %p1055_p3 }
 0x164   :  { %582 = vadd.xlane.f32.xlu0 %v579_v54 }
 0x165   :  { %p1058_p6 = pnand %p1057_p5, %p1051_p2 }
 0x168   :  { %580 = vadd.xlane.f32.xlu0 %v578_v55 }
 0x1f1   :  { %v583_v58 = vpop.xlane.xlu0 %582 }
 0x1f2   :  { %v592_v59 = vadd.f32 %v870_v57, %v583_v58 }
 0x1f4   :  { %v601_v60 = vsel %vm593_vm0, %v592_v59, -inf }
 0x1f5   :  { %v602_v61 = vrot.slane %v601_v60, 4  ;;  %v581_v62 = vpop.xlane.xlu0 %580 }
 0x1f6   :  { %v591_v63 = vadd.f32 %v870_v57, %v581_v62  ;;  %v1222_v57 = vrot.slane %v698_v44, %v141_v16 }
 0x1f7   :  { %v603_v0 = vmax.f32 %v601_v60, %v602_v61 }
 0x1f8   :  { %v594_v1 = vsel %vm593_vm0, %v591_v63, -inf }
 0x1f9   :  { %v604_v2 = vrot.slane %v603_v0, 2  ;;  %v595_v3 = vrot.slane %v594_v1, 4 }
 0x1fb   :  { %v605_v4 = vmax.f32 %v603_v0, %v604_v2  ;;  %v596_v5 = vmax.f32 %v594_v1, %v595_v3 }
 0x1fd   :  { %v606_v6 = vrot.slane %v605_v4, 1  ;;  %v597_v7 = vrot.slane %v596_v5, 2 }
 0x1ff   :  { %v607_v12 = vmax.f32 %v605_v4, %v606_v6  ;;  %v598_v13 = vmax.f32 %v596_v5, %v597_v7 }
 0x201   :  { %v609_v17 = vsub.f32 %v592_v59, %v607_v12  ;;  %v599_v19 = vrot.slane %v598_v13, 1 }
 0x203   :  { %v612_v20 = vmul.f32 1.442695, %v609_v17  ;;  %v600_v21 = vmax.f32 %v598_v13, %v599_v19 }
 0x205   :  { %998 = vpow2.f32 %v612_v20  ;;  %v608_v22 = vsub.f32 %v591_v63, %v600_v21 }
 0x207   :  { %v610_v23 = vmul.f32 1.442695, %v608_v22 }
 0x209   :  { %1000 = vpow2.f32 %v610_v23 }
 0x20f   :  { %v999_v24 = vpop.eup %998 }
 0x210   :  { %v621_v25 = vsel %vm593_vm0, %v999_v24, 0.0 }
 0x211   :  { %v622_v26 = vrot.slane %v621_v25, 4 }
 0x213   :  { %v1001_v27 = vpop.eup %1000  ;;  %v623_v28 = vadd.f32 %v622_v26, %v621_v25 }
 0x214   :  { %v614_v29 = vsel %vm593_vm0, %v1001_v27, 0.0 }
 0x215   :  { %v624_v30 = vrot.slane %v623_v28, 2  ;;  %v615_v31 = vrot.slane %v614_v29, 4 }
 0x217   :  { %v625_v32 = vadd.f32 %v624_v30, %v623_v28  ;;  %v616_v33 = vadd.f32 %v615_v31, %v614_v29 }
 0x219   :  { %v617_v34 = vrot.slane %v616_v33, 2  ;;  %v626_v35 = vrot.slane %v625_v32, 1 }
 0x21b   :  { %v627_v36 = vadd.f32 %v626_v35, %v625_v32  ;;  %v618_v37 = vadd.f32 %v617_v34, %v616_v33 }
 0x21d   :  { %1002 = vrcp.f32 %v627_v36  ;;  %v619_v38 = vrot.slane %v618_v37, 1 }
 0x21f   :  { %v620_v39 = vadd.f32 %v619_v38, %v618_v37 }
 0x221   :  { %1004 = vrcp.f32 %v620_v39 }
 0x227   :  { %v1003_v40 = vpop.eup %1002 }
 0x228   :  { %v631_v41 = vmul.f32 %v1003_v40, %v999_v24 }
 0x22a   :  { %639 = vperm.xlu1 %888, %v631_v41  }
 0x22b   :  { %v1005_v42 = vpop.eup %1004 }
 0x22c   :  { %v630_v43 = vmul.f32 %v1005_v42, %v1001_v27 }
 0x22e   :  { %634 = vperm.xlu1 %888, %v630_v43  }
 0x2a9   :  { %v1207_v45 = vpop.permute.xlu1 %639 }
 0x2aa   :  { %v646_v53 = vmul.f32 %v1207_v45, %v1175_v9  ;;  %v647_v54 = vmul.f32 %v1207_v45, %v1163_v49  ;;  %v648_v55 = vmul.f32 %v1207_v45, %v1179_v11  ;;  %v649_v56 = vmul.f32 %v1207_v45, %v1167_v51 }
 0x2ab   :  { %v1226_v9 = vrot.slane %v698_v44, %v145_v18  ;;  %v1229_v49 = vsub.s32 %v770_v46, %v1186_v15  ;;  %v1233_v11 = vrot.slane %v698_v44, %v710_v47  ;;  %v1235_v51 = vrot.slane %v698_v44, %v714_v52 }
 0x2ac   :  { %v674_v14 = vrot.slane %v646_v53, 4  ;;  %v680_v58 = vrot.slane %v647_v54, 4  ;;  %v686_v59 = vrot.slane %v648_v55, 4  ;;  %v692_v60 = vrot.slane %v649_v56, 4 }
 0x2ad   :  { %v1231_v61 = vpop.permute.xlu1 %634 }
 0x2ae   :  { %v675_v62 = vadd.f32 %v674_v14, %v646_v53  ;;  %v681_v16 = vadd.f32 %v680_v58, %v647_v54  ;;  %v687_v63 = vadd.f32 %v686_v59, %v648_v55  ;;  %v693_v0 = vadd.f32 %v692_v60, %v649_v56 }
 0x2af   :  { %v642_v1 = vmul.f32 %v1231_v61, %v1173_v8  ;;  %v643_v18 = vmul.f32 %v1231_v61, %v1161_v48  ;;  %v644_v15 = vmul.f32 %v1231_v61, %v1177_v10  ;;  %v645_v2 = vmul.f32 %v1231_v61, %v1165_v50 }
 0x2b0   :  { %v676_v3 = vrot.slane %v675_v62, 2  ;;  %v682_v4 = vrot.slane %v681_v16, 2  ;;  %v688_v5 = vrot.slane %v687_v63, 2  ;;  %v694_v6 = vrot.slane %v693_v0, 2 }
 0x2b1   :  { %v650_v7 = vrot.slane %v642_v1, 4  ;;  %v656_v12 = vrot.slane %v643_v18, 4  ;;  %v662_v13 = vrot.slane %v644_v15, 4  ;;  %v668_v17 = vrot.slane %v645_v2, 4 }
 0x2b2   :  { %v677_v19 = vadd.f32 %v676_v3, %v675_v62  ;;  %v683_v8 = vadd.f32 %v682_v4, %v681_v16  ;;  %v689_v20 = vadd.f32 %v688_v5, %v687_v63  ;;  %v774_v48 = vrot.slane %v1231_v61, %v1229_v49 }
 0x2b3   :  { %v651_v21 = vadd.f32 %v650_v7, %v642_v1  ;;  %v657_v10 = vadd.f32 %v656_v12, %v643_v18  ;;  %v663_v22 = vadd.f32 %v662_v13, %v644_v15  ;;  %v669_v23 = vadd.f32 %v668_v17, %v645_v2 }
 0x2b4   :  { %v678_v50 = vrot.slane %v677_v19, 1  ;;  %v684_v24 = vrot.slane %v683_v8, 1  ;;  %v690_v25 = vrot.slane %v689_v20, 1  ;;  %v695_v26 = vadd.f32 %v694_v6, %v693_v0 }
 0x2b5   :  { %v652_v27 = vrot.slane %v651_v21, 2  ;;  %v658_v28 = vrot.slane %v657_v10, 2  ;;  %v664_v29 = vrot.slane %v663_v22, 2  ;;  %v670_v30 = vrot.slane %v669_v23, 2 }
 0x2b6   :  { %v679_v31 = vadd.f32 %v678_v50, %v677_v19  ;;  %v685_v32 = vadd.f32 %v684_v24, %v683_v8  ;;  %v691_v33 = vadd.f32 %v690_v25, %v689_v20  ;;  %v696_v34 = vrot.slane %v695_v26, 1 }
 0x2b7   :  { %v653_v35 = vadd.f32 %v652_v27, %v651_v21  ;;  %v659_v36 = vadd.f32 %v658_v28, %v657_v10  ;;  %v665_v37 = vadd.f32 %v664_v29, %v663_v22  ;;  %v671_v38 = vadd.f32 %v670_v30, %v669_v23 }
 0x2b8   :  { %v697_v39 = vadd.f32 %v696_v34, %v695_v26  ;;  %v724_v40 = vmul.f32 %v1222_v57, %v679_v31  ;;  %v725_v41 = vmul.f32 %v1226_v9, %v685_v32  ;;  %v726_v42 = vmul.f32 %v1233_v11, %v691_v33 }
 0x2b9   :  { %v654_v43 = vrot.slane %v653_v35, 1  ;;  %v660_v44 = vrot.slane %v659_v36, 1  ;;  %v666_v46 = vrot.slane %v665_v37, 1  ;;  %v672_v47 = vrot.slane %v671_v38, 1 }
 0x2ba   :  { %v727_v52 = vmul.f32 %v1235_v51, %v697_v39  ;;  %v778_v53 = vrot.slane %v1207_v45, %v1229_v49  ;;  %v736_v58 = vrot.slane %v724_v40, 7  ;;  %v739_v59 = vrot.slane %v725_v41, 7 }
 0x2bb   :  { %v655_v54 = vadd.f32 %v654_v43, %v653_v35  ;;  %v661_v55 = vadd.f32 %v660_v44, %v659_v36  ;;  %v667_v56 = vadd.f32 %v666_v46, %v665_v37  ;;  %v673_v14 = vadd.f32 %v672_v47, %v671_v38 }
 0x2bc   :  { %v741_v60 = vrot.slane %v726_v42, 7  ;;  %v779_v61 = vsel %vm737_vm1, %v778_v53, %v774_v48  ;;  %v743_v18 = vrot.slane %v727_v52, 7 }
 0x2bd   :  { %v720_v62 = vmul.f32 %v1222_v57, %v655_v54  ;;  %v721_v16 = vmul.f32 %v1226_v9, %v661_v55  ;;  %v722_v63 = vmul.f32 %v1233_v11, %v667_v56  ;;  %v723_v0 = vmul.f32 %v1235_v51, %v673_v14  ;;  %782 = vst.msk [vmem:[#allocation9] sm:$0x3] %vm781_vm3, %v779_v61 }
 0x2bf   :  { %v738_v45 = vsel %vm737_vm1, %v736_v58, %v720_v62  ;;  %v740_v49 = vsel %vm737_vm1, %v739_v59, %v721_v16  ;;  %v742_v1 = vsel %vm737_vm1, %v741_v60, %v722_v63  ;;  %v744_v57 = vsel %vm737_vm1, %v743_v18, %v723_v0 }
 0x2c0   :  { %v750_v15 = vsel %vm749_vm2, %v738_v45, 0.0  ;;  %v751_v2 = vsel %vm749_vm2, %v740_v49, 0.0  ;;  %v753_v9 = vsel %vm749_vm2, %v742_v1, 0.0  ;;  %v755_v51 = vsel %vm749_vm2, %v744_v57, 0.0 }
 0x2c1   :  { %v752_v3 = vadd.f32 %v751_v2, %v750_v15 }
 0x2c3   :  { %v754_v11 = vadd.f32 %v753_v9, %v752_v3 }
 0x2c5   :  { %v756_v4 = vadd.f32 %v755_v51, %v754_v11 }
 0x2c7   :  { %757 = vadd.xlane.f32.xlu0 %v756_v4 }
 0x2c8   :  { %1061 = shalt.err (!%p1058_p6)
}
 0x2c9   :  { %s1062_s17 = scalar_lea.hbm %s1288_s8, 32 }
 0x2ca   :  { %p1063_p7 = scmp.ne.s32.totalorder %s1288_s8, %s1062_s17  ;;  %p1066_p8 = scmp.lt.u32.totalorder %s1062_s17, %s1288_s8 }
 0x2cc   :  { %p1068_p9 = pnand %p1066_p8, %p1063_p7 }
 0x2ce   :  { %1071 = shalt.err (!%p1068_p9)
}
 0x2cf   :  { %794 = dma.vmem_to_hbm [thread:$0]  %s792_s15, 32, %s1288_s8, [#allocation6]   ;;  %v871_v5 = vld [vmem:[#allocation3] ss:$0 sm:$0xff]  ;;  %vm767_vm4 = vcmask 1024  }
 0x354   :  { %v758_v6 = vpop.xlane.xlu0 %757 }
 0x355   :  { %v766_v7 = vadd.f32 %v871_v5, %v758_v6 }
 0x357   :  { %768 = vst.msk [vmem:[%s1287_s7] sm:$0x3] %vm767_vm4, %v766_v7 }
 0x358   :  { %1076 = dma.done.wait [#allocation6], 32  }
 0x359   :  { %1077 = vsyncadd [#allocation6], 4294967264 }
 0x35a   :  { %800 = vsyncpa [#allocation5], 1 }
 0x35b   :  { %801 = vsyncpa [#allocation8], 1 }
 0x35c   :  { %802 = vsyncpa [#allocation6], 1 }

</bundles_post_ra>
